<compile_context>
chip_gen: v7x
topology: tpu7x:2x2x1
jax: 0.10.0
libtpu: 0.0.40
codegen_flags: <defaults>
</compile_context>

<pallas_src>
import jax
import jax.numpy as jnp
from jax.experimental import pallas as pl
from jax.experimental.pallas import tpu as pltpu


def _round_up(x, m):
    return ((x + m - 1) // m) * m


def _critic_kernel(x_ref, a_ref,
                   w1_ref, b1_ref,
                   w2o_ref, w2a_ref, b2_ref,
                   w3_ref, b3_ref,
                   out_ref):
    # Layer 1: obs = relu(x_em @ W1 + b1)                      -> (tm, 400)
    # bf16 MXU operands, f32 accumulation. Bias add / ReLU stay f32 (no bf16 VPU on
    # v5e); the result is cast once to bf16 so the big intermediate lives in bf16.
    x16 = x_ref[...].astype(jnp.bfloat16)
    obs_f32 = jnp.dot(x16, w1_ref[...], preferred_element_type=jnp.float32)
    obs16 = jnp.maximum(obs_f32 + b1_ref[...], 0.0).astype(jnp.bfloat16)

    # Layer 2: h = relu(cat([obs, a]) @ W2 + b2)
    #            = relu(obs @ W2_obs + a @ W2_act + b2)        -> (tm, 300)
    a16 = a_ref[...].astype(jnp.bfloat16)
    h = (jnp.dot(obs16, w2o_ref[...], preferred_element_type=jnp.float32)
         + jnp.dot(a16, w2a_ref[...], preferred_element_type=jnp.float32)
         + b2_ref[...])
    h = jnp.maximum(h, 0.0)

    # Layer 3: q = h @ W3 + b3 with N=1 -> VPU multiply + lane reduction instead of a
    # degenerate (300, 1) MXU matmul. w3 is stored lane-major as (1, 300).
    q = jnp.sum(h * w3_ref[...], axis=-1, keepdims=True) + b3_ref[0]   # (tm, 1) f32

    # Compact store: ~tm/8 masked vregs and 4 B/row of HBM writeback (vs the previous
    # 512 B/row lane-dense slab).
    out_ref[...] = q


def _pick_tile(batch):
    """Largest batch tile up to 1024 rows that still yields >= 2 grid steps whenever
    the batch allows it (keeps both v7x TensorCores busy); single tile for tiny B."""
    if batch <= 8:
        return batch                      # block == full batch dim -> legal block shape
    return min(1024, _round_up(pl.cdiv(batch, 2), 8))


def per_ddpg_critic_forward(x_em, a, params):
    """Fused critic forward. Batch axis is tiled over a 1-D parallel grid; all weights
    fit VMEM and are resident (constant block index) across grid steps."""
    w1, b1, w2o, w2a, b2, w3_row, b3 = params
    x_em = x_em.astype(jnp.float32)
    a = a.astype(jnp.float32)

    B, F1 = x_em.shape
    A = a.shape[1]
    H1 = w1.shape[1]          # 400
    H2 = w2o.shape[1]         # 300

    tm = _pick_tile(B)
    grid = (pl.cdiv(B, tm),)  # ragged final block handled by Pallas; no wrapper pad

    def shared(arr):          # full-array block, resident across all grid steps
        nd = arr.ndim
        return pl.BlockSpec(arr.shape, lambda i, _nd=nd: (0,) * _nd)

    flops = 2 * B * (F1 * H1 + H1 * H2 + A * H2 + H2)
    bytes_accessed = (x_em.size * 4 + a.size * 4 + B * 4
                      + (w1.size + w2o.size + w2a.size) * 2
                      + (b1.size + b2.size + w3_row.size + b3.size) * 4)

    out = pl.pallas_call(
        _critic_kernel,
        out_shape=jax.ShapeDtypeStruct((B, 1), jnp.float32),
        grid=grid,
        in_specs=[
            pl.BlockSpec((tm, F1), lambda i: (i, 0)),           # x_em tile
            pl.BlockSpec((tm, A), lambda i: (i, 0)),            # a tile
            shared(w1), shared(b1),
            shared(w2o), shared(w2a), shared(b2),
            shared(w3_row),
            pl.BlockSpec(memory_space=pltpu.MemorySpace.SMEM),  # b3 scalar in SMEM
        ],
        out_specs=pl.BlockSpec((tm, 1), lambda i: (i, 0)),
        compiler_params=pltpu.CompilerParams(
            dimension_semantics=("parallel",)),
        cost_estimate=pl.CostEstimate(flops=flops, transcendentals=0,
                                      bytes_accessed=bytes_accessed),
    )(x_em, a, w1, b1, w2o, w2a, b2, w3_row, b3)

    return out


def init_params(key, obs_size, act_size, dim_embedding):
    """Synthetic init mirroring nn.Linear defaults (uniform +/- 1/sqrt(fan_in)).

    Returns (kernel_params, f32_params): kernel params carry bf16 matmul weights,
    f32 params are the unquantized originals used for the exact-semantics check.
    """
    in1 = obs_size + dim_embedding          # -> 400
    in2 = 400 + act_size                    # -> 300
    ks = jax.random.split(key, 6)

    def lin(kw, kb, fan_in, fan_out):
        bound = 1.0 / (fan_in ** 0.5)
        w = jax.random.uniform(kw, (fan_in, fan_out), jnp.float32, -bound, bound)
        b = jax.random.uniform(kb, (1, fan_out), jnp.float32, -bound, bound)
        return w, b

    w1, b1 = lin(ks[0], ks[1], in1, 400)
    w2, b2 = lin(ks[2], ks[3], in2, 300)
    w3, b3 = lin(ks[4], ks[5], 300, 1)

    # Split W2 into obs / act parts (identical to concat-then-matmul).
    w2o, w2a = w2[:400, :], w2[400:, :]
    w3_row = w3.T                      # (1, 300) lane-major row for the VPU reduction
    b3_s = b3.reshape((1,))            # scalar, goes through SMEM

    params_f32 = (w1, b1, w2o, w2a, b2, w3_row, b3_s)
    params_kernel = (w1.astype(jnp.bfloat16), b1,
                     w2o.astype(jnp.bfloat16), w2a.astype(jnp.bfloat16), b2,
                     w3_row, b3_s)
    return params_kernel, params_f32


def reference_forward(x_em, a, params, *, quantize_lhs=False):
    """Pure-JAX reference. With quantize_lhs=True it mirrors the kernel's bf16
    operand rounding exactly (f32 accumulation via HIGHEST precision)."""
    w1, b1, w2o, w2a, b2, w3_row, b3 = params
    hp = jax.lax.Precision.HIGHEST
    f32 = lambda t: t.astype(jnp.float32)

    x = x_em.astype(jnp.float32)
    av = a.astype(jnp.float32)
    if quantize_lhs:
        x = f32(x.astype(jnp.bfloat16))
        av = f32(av.astype(jnp.bfloat16))

    obs = jnp.maximum(jnp.dot(x, f32(w1), precision=hp) + b1, 0.0)
    obs2 = f32(obs.astype(jnp.bfloat16)) if quantize_lhs else obs
    h = jnp.maximum(jnp.dot(obs2, f32(w2o), precision=hp)
                    + jnp.dot(av, f32(w2a), precision=hp) + b2, 0.0)
    return jnp.sum(h * f32(w3_row), axis=-1, keepdims=True) + b3


if __name__ == "__main__":
    obs_size = 16
    act_size = 6
    dim_embedding = 8
    batch = 8

    key = jax.random.PRNGKey(0)
    k_x, k_a, k_p = jax.random.split(key, 3)

    x_em = jax.random.normal(k_x, (batch, obs_size + dim_embedding), jnp.float32)
    a = jax.random.normal(k_a, (batch, act_size), jnp.float32)

    params_kernel, params_f32 = init_params(k_p, obs_size, act_size, dim_embedding)

    out = jax.block_until_ready(per_ddpg_critic_forward(x_em, a, params_kernel))
    assert out.shape == (batch, 1)

    # Tight check against a reference using the exact same bf16-quantized operands.
    ref_q = reference_forward(x_em, a, params_kernel, quantize_lhs=True)
    assert jnp.allclose(out, ref_q, atol=1e-3, rtol=1e-3), "mismatch vs bf16-consistent reference"

    # Semantics check against the full-f32 (PyTorch-equivalent) forward; difference is
    # only the intentional bf16 weight/operand quantization.
    ref_f = reference_forward(x_em, a, params_f32, quantize_lhs=False)
    assert jnp.allclose(out, ref_f, atol=3e-2, rtol=3e-2), "mismatch vs f32 reference"

    print("KERNEL_OK")
</pallas_src>

<mosaic_0001>
module attributes {stable_mosaic.version = 11 : i64} {
  func.func @_critic_kernel(%arg0: i32, %arg1: memref<8x24xf32, #tpu.memory_space<vmem>>, %arg2: memref<8x6xf32, #tpu.memory_space<vmem>>, %arg3: memref<24x400xbf16, #tpu.memory_space<vmem>>, %arg4: memref<1x400xf32, #tpu.memory_space<vmem>>, %arg5: memref<400x300xbf16, #tpu.memory_space<vmem>>, %arg6: memref<6x300xbf16, #tpu.memory_space<vmem>>, %arg7: memref<1x300xf32, #tpu.memory_space<vmem>>, %arg8: memref<1x300xf32, #tpu.memory_space<vmem>>, %arg9: memref<1xf32, #tpu.memory_space<smem>>, %arg10: memref<8x1xf32, #tpu.memory_space<vmem>>) attributes {dimension_semantics = [#tpu.dimension_semantics<parallel>], iteration_bounds = array<i64: 1>, scalar_prefetch = 0 : i64, scratch_operands = 0 : i64, tpu.core_type = #tpu.core_type<tc>, window_params = [{transform_indices = @transform_0, window_bounds = array<i64: 8, 24>}, {transform_indices = @transform_1, window_bounds = array<i64: 8, 6>}, {pipeline_mode = #tpu.pipeline_mode<synchronous>, transform_indices = @transform_2, window_bounds = array<i64: 24, 400>}, {pipeline_mode = #tpu.pipeline_mode<synchronous>, transform_indices = @transform_3, window_bounds = array<i64: 1, 400>}, {pipeline_mode = #tpu.pipeline_mode<synchronous>, transform_indices = @transform_4, window_bounds = array<i64: 400, 300>}, {pipeline_mode = #tpu.pipeline_mode<synchronous>, transform_indices = @transform_5, window_bounds = array<i64: 6, 300>}, {pipeline_mode = #tpu.pipeline_mode<synchronous>, transform_indices = @transform_6, window_bounds = array<i64: 1, 300>}, {pipeline_mode = #tpu.pipeline_mode<synchronous>, transform_indices = @transform_7, window_bounds = array<i64: 1, 300>}, {transform_indices = @transform_8, window_bounds = array<i64: 1>}, {transform_indices = @transform_9, window_bounds = array<i64: 8, 1>}]} {
    %c0 = arith.constant 0 : index
    %c0_0 = arith.constant 0 : index
    %0 = vector.load %arg1[%c0, %c0_0] : memref<8x24xf32, #tpu.memory_space<vmem>>, vector<8x24xf32>
    %1 = arith.truncf %0 : vector<8x24xf32> to vector<8x24xbf16>
    %c0_1 = arith.constant 0 : index
    %c0_2 = arith.constant 0 : index
    %2 = vector.load %arg3[%c0_1, %c0_2] : memref<24x400xbf16, #tpu.memory_space<vmem>>, vector<24x400xbf16>
    %cst = arith.constant dense<0.000000e+00> : vector<8x400xf32>
    %3 = tpu.matmul %1, %2, %cst {dimension_numbers = #tpu.dot_dimension_numbers<[1], [0], [0], [1], [0, 0, 1, 1], [], []>} : vector<8x24xbf16>, vector<24x400xbf16>, vector<8x400xf32> -> vector<8x400xf32>
    %c0_3 = arith.constant 0 : index
    %c0_4 = arith.constant 0 : index
    %4 = vector.load %arg4[%c0_3, %c0_4] : memref<1x400xf32, #tpu.memory_space<vmem>>, vector<1x400xf32>
    %5 = vector.broadcast %4 : vector<1x400xf32> to vector<8x400xf32>
    %6 = arith.addf %3, %5 : vector<8x400xf32>
    %cst_5 = arith.constant 0.000000e+00 : f32
    %7 = vector.broadcast %cst_5 : f32 to vector<8x400xf32>
    %8 = arith.maximumf %6, %7 : vector<8x400xf32>
    %9 = arith.truncf %8 : vector<8x400xf32> to vector<8x400xbf16>
    %c0_6 = arith.constant 0 : index
    %c0_7 = arith.constant 0 : index
    %10 = vector.load %arg2[%c0_6, %c0_7] : memref<8x6xf32, #tpu.memory_space<vmem>>, vector<8x6xf32>
    %11 = arith.truncf %10 : vector<8x6xf32> to vector<8x6xbf16>
    %c0_8 = arith.constant 0 : index
    %c0_9 = arith.constant 0 : index
    %12 = vector.load %arg5[%c0_8, %c0_9] : memref<400x300xbf16, #tpu.memory_space<vmem>>, vector<400x300xbf16>
    %cst_10 = arith.constant dense<0.000000e+00> : vector<8x300xf32>
    %13 = tpu.matmul %9, %12, %cst_10 {dimension_numbers = #tpu.dot_dimension_numbers<[1], [0], [0], [1], [0, 0, 1, 1], [], []>} : vector<8x400xbf16>, vector<400x300xbf16>, vector<8x300xf32> -> vector<8x300xf32>
    %c0_11 = arith.constant 0 : index
    %c0_12 = arith.constant 0 : index
    %14 = vector.load %arg6[%c0_11, %c0_12] : memref<6x300xbf16, #tpu.memory_space<vmem>>, vector<6x300xbf16>
    %cst_13 = arith.constant dense<0.000000e+00> : vector<8x300xf32>
    %15 = tpu.matmul %11, %14, %cst_13 {dimension_numbers = #tpu.dot_dimension_numbers<[1], [0], [0], [1], [0, 0, 1, 1], [], []>} : vector<8x6xbf16>, vector<6x300xbf16>, vector<8x300xf32> -> vector<8x300xf32>
    %16 = arith.addf %13, %15 : vector<8x300xf32>
    %c0_14 = arith.constant 0 : index
    %c0_15 = arith.constant 0 : index
    %17 = vector.load %arg7[%c0_14, %c0_15] : memref<1x300xf32, #tpu.memory_space<vmem>>, vector<1x300xf32>
    %18 = vector.broadcast %17 : vector<1x300xf32> to vector<8x300xf32>
    %19 = arith.addf %16, %18 : vector<8x300xf32>
    %cst_16 = arith.constant 0.000000e+00 : f32
    %20 = vector.broadcast %cst_16 : f32 to vector<8x300xf32>
    %21 = arith.maximumf %19, %20 : vector<8x300xf32>
    %c0_17 = arith.constant 0 : index
    %c0_18 = arith.constant 0 : index
    %22 = vector.load %arg8[%c0_17, %c0_18] : memref<1x300xf32, #tpu.memory_space<vmem>>, vector<1x300xf32>
    %23 = vector.broadcast %22 : vector<1x300xf32> to vector<8x300xf32>
    %24 = arith.mulf %21, %23 : vector<8x300xf32>
    %cst_19 = arith.constant dense<0.000000e+00> : vector<8xf32>
    %25 = vector.multi_reduction <add>, %24, %cst_19 [1] : vector<8x300xf32> to vector<8xf32>
    %26 = vector.shape_cast %25 : vector<8xf32> to vector<8x1xf32>
    %c0_20 = arith.constant 0 : index
    %27 = memref.load %arg9[%c0_20] : memref<1xf32, #tpu.memory_space<smem>>
    %28 = vector.broadcast %27 : f32 to vector<8x1xf32>
    %29 = arith.addf %26, %28 : vector<8x1xf32>
    %c0_21 = arith.constant 0 : index
    %c0_22 = arith.constant 0 : index
    %30 = vector.load %arg10[%c0_21, %c0_22] : memref<8x1xf32, #tpu.memory_space<vmem>>, vector<8x1xf32>
    tpu.vector_store %arg10[%c0_21, %c0_22], %29 {strides = array<i32>} : memref<8x1xf32, #tpu.memory_space<vmem>>, vector<8x1xf32>,
    return
  }
  func.func @transform_0(%arg0: i32) -> (i32, i32) {
    %c0_i32 = arith.constant 0 : i32
    %c0_i32_0 = arith.constant 0 : i32
    return %arg0, %c0_i32 : i32, i32
  }
  func.func @transform_1(%arg0: i32) -> (i32, i32) {
    %c0_i32 = arith.constant 0 : i32
    %c0_i32_0 = arith.constant 0 : i32
    return %arg0, %c0_i32 : i32, i32
  }
  func.func @transform_2(%arg0: i32) -> (i32, i32) {
    %c0_i32 = arith.constant 0 : i32
    %c0_i32_0 = arith.constant 0 : i32
    %c0_i32_1 = arith.constant 0 : i32
    return %c0_i32, %c0_i32_0 : i32, i32
  }
  func.func @transform_3(%arg0: i32) -> (i32, i32) {
    %c0_i32 = arith.constant 0 : i32
    %c0_i32_0 = arith.constant 0 : i32
    %c0_i32_1 = arith.constant 0 : i32
    return %c0_i32, %c0_i32_0 : i32, i32
  }
  func.func @transform_4(%arg0: i32) -> (i32, i32) {
    %c0_i32 = arith.constant 0 : i32
    %c0_i32_0 = arith.constant 0 : i32
    %c0_i32_1 = arith.constant 0 : i32
    return %c0_i32, %c0_i32_0 : i32, i32
  }
  func.func @transform_5(%arg0: i32) -> (i32, i32) {
    %c0_i32 = arith.constant 0 : i32
    %c0_i32_0 = arith.constant 0 : i32
    %c0_i32_1 = arith.constant 0 : i32
    return %c0_i32, %c0_i32_0 : i32, i32
  }
  func.func @transform_6(%arg0: i32) -> (i32, i32) {
    %c0_i32 = arith.constant 0 : i32
    %c0_i32_0 = arith.constant 0 : i32
    %c0_i32_1 = arith.constant 0 : i32
    return %c0_i32, %c0_i32_0 : i32, i32
  }
  func.func @transform_7(%arg0: i32) -> (i32, i32) {
    %c0_i32 = arith.constant 0 : i32
    %c0_i32_0 = arith.constant 0 : i32
    %c0_i32_1 = arith.constant 0 : i32
    return %c0_i32, %c0_i32_0 : i32, i32
  }
  func.func @transform_8(%arg0: i32) -> i32 {
    %c0_i32 = arith.constant 0 : i32
    %c0_i32_0 = arith.constant 0 : i32
    return %c0_i32 : i32
  }
  func.func @transform_9(%arg0: i32) -> (i32, i32) {
    %c0_i32 = arith.constant 0 : i32
    %c0_i32_0 = arith.constant 0 : i32
    return %arg0, %c0_i32 : i32, i32
  }
}

</mosaic_0001>

<bundles_post_ra>
// kernel: tpu_custom_call.1
= control target key start
LH: loop header
LB: loop body
LE: loop exit
PB: predicated region body
PF: predicated region fallthrough
CT: control target
= control target key end

     0   :  { %15 = vsyncpa [#allocation4], 0  ;;  %s1604_s0 = inlined_call_operand.hbm [shape: f32[8,24], index: 0, kind: input, shape index: {}]   ;;  %s1605_s1 = inlined_call_operand.hbm [shape: f32[8,6], index: 1, kind: input, shape index: {}]   ;;  %s1606_s2 = inlined_call_operand.hbm [shape: bf16[24,400], index: 2, kind: input, shape index: {}]   ;;  %s1607_s3 = inlined_call_operand.vmem [shape: f32[1,400], index: 3, kind: input, shape index: {}]   ;;  %s1608_s4 = inlined_call_operand.hbm [shape: bf16[400,300], index: 4, kind: input, shape index: {}]   ;;  %s1609_s5 = inlined_call_operand.vmem [shape: bf16[6,300], index: 5, kind: input, shape index: {}]   ;;  %s1610_s6 = inlined_call_operand.vmem [shape: f32[1,300], index: 6, kind: input, shape index: {}]   ;;  %s1611_s7 = inlined_call_operand.vmem [shape: f32[1,300], index: 7, kind: input, shape index: {}]   ;;  %s1612_s8 = inlined_call_operand.<no memory space> [shape: f32[1], index: 8, kind: input, shape index: {}]   ;;  %s1613_s9 = inlined_call_operand.vmem [shape: f32[8,1], index: 9, kind: output, shape index: {}]  }
   0x1   :  { %16 = vsyncpa [#allocation6], 0 }
   0x2   :  { %17 = vsyncpa [#allocation9], 0  ;;  %s1429_s30 = smov [#allocation5]   ;;  %s1430_s11 = smov [#allocation3]  }
   0x3   :  { %s34_s10 = sshll.u32 %s1429_s30, 4  ;;  %s24_s12 = sshll.u32 %s1430_s11, 4  ;;  %s35_s10 = int_to_ptr.vmem [resolvable:$true] %s34_s10  ;;  %s25_s12 = int_to_ptr.vmem [resolvable:$true] %s24_s12 }
   0x4   :  { %s1335_s15 = scalar_lea.hbm %s1605_s1, 128 }
   0x5   :  { %p1336_p0 = scmp.ne.s32.totalorder %s1605_s1, %s1335_s15  ;;  %p1339_p1 = scmp.lt.u32.totalorder %s1335_s15, %s1605_s1 }
   0x7   :  { %p1341_p2 = pnand %p1339_p1, %p1336_p0 }
   0x9   :  { %1344 = shalt.err (!%p1341_p2)
}
   0xa   :  { %s1345_s20 = scalar_lea.vmem %s35_s10, 128  ;;  %p1350_p4 = scmp.lt.s32.totalorder %s35_s10, %s35_s10 }
   0xb   :  { %p1346_p3 = scmp.ne.s32.totalorder %s35_s10, %s1345_s20  ;;  %p1351_p5 = scmp.lt.s32.totalorder %s1345_s20, %s1345_s20 }
   0xd   :  { %p1352_p6 = por %p1351_p5, %p1350_p4 }
   0xf   :  { %p1353_p7 = pnand %p1352_p6, %p1346_p3 }
  0x11   :  { %1356 = shalt.err (!%p1353_p7)
}
  0x12   :  { %37 = dma.hbm_to_vmem [thread:$0]  %s1605_s1, 128, %s35_s10, [#allocation6]  }
  0x13   :  { %s1357_s25 = scalar_lea.hbm %s1604_s0, 128 }
  0x14   :  { %p1358_p8 = scmp.ne.s32.totalorder %s1604_s0, %s1357_s25  ;;  %p1361_p9 = scmp.lt.u32.totalorder %s1357_s25, %s1604_s0 }
  0x16   :  { %p1363_p10 = pnand %p1361_p9, %p1358_p8 }
  0x18   :  { %1366 = shalt.err (!%p1363_p10)
}
  0x19   :  { %s1367_s30 = scalar_lea.vmem %s25_s12, 128  ;;  %p1372_p12 = scmp.lt.s32.totalorder %s25_s12, %s25_s12 }
  0x1a   :  { %p1368_p11 = scmp.ne.s32.totalorder %s25_s12, %s1367_s30  ;;  %p1373_p13 = scmp.lt.s32.totalorder %s1367_s30, %s1367_s30 }
  0x1c   :  { %p1374_p0 = por %p1373_p13, %p1372_p12 }
  0x1e   :  { %p1375_p1 = pnand %p1374_p0, %p1368_p11 }
  0x20   :  { %1378 = shalt.err (!%p1375_p1)
}
  0x21   :  { %27 = dma.hbm_to_vmem [thread:$0]  %s1604_s0, 128, %s25_s12, [#allocation4]  }
  0x22   :  { %s1431_s11 = smov [#allocation7]   ;;  %s1379_s16 = scalar_lea.hbm %s1606_s2, 768 }
  0x23   :  { %s43_s13 = sshll.u32 %s1431_s11, 4  ;;  %p1380_p2 = scmp.ne.s32.totalorder %s1606_s2, %s1379_s16  ;;  %s44_s13 = int_to_ptr.vmem [resolvable:$true] %s43_s13 }
  0x24   :  { %p1383_p3 = scmp.lt.u32.totalorder %s1379_s16, %s1606_s2 }
  0x26   :  { %p1385_p4 = pnand %p1383_p3, %p1380_p2 }
  0x28   :  { %1388 = shalt.err (!%p1385_p4)
}
  0x29   :  { %s1389_s21 = scalar_lea.vmem %s44_s13, 768  ;;  %p1394_p6 = scmp.lt.s32.totalorder %s44_s13, %s44_s13 }
  0x2a   :  { %p1390_p5 = scmp.ne.s32.totalorder %s44_s13, %s1389_s21  ;;  %p1395_p7 = scmp.lt.s32.totalorder %s1389_s21, %s1389_s21 }
  0x2c   :  { %p1396_p8 = por %p1395_p7, %p1394_p6 }
  0x2e   :  { %p1397_p9 = pnand %p1396_p8, %p1390_p5 }
  0x30   :  { %1400 = shalt.err (!%p1397_p9)
}
  0x31   :  { %s1432_s0 = smov 256   ;;  %s1433_s12 = smov 16  }
  0x32   :  { %49 = dma.hbm_to_vmem [thread:$0]  %s1606_s2, 768, %s44_s13, [#allocation6], %s1432_s0, %s1432_s0, %s1433_s12  }
  0x33   :  { %s1434_s24 = smov [#allocation8]   ;;  %s1401_s28 = scalar_lea.hbm %s1608_s4, 9600 }
  0x34   :  { %s57_s25 = sshll.u32 %s1434_s24, 4  ;;  %p1402_p10 = scmp.ne.s32.totalorder %s1608_s4, %s1401_s28  ;;  %s58_s25 = int_to_ptr.vmem [resolvable:$true] %s57_s25 }
  0x35   :  { %p1405_p11 = scmp.lt.u32.totalorder %s1401_s28, %s1608_s4 }
  0x37   :  { %p1407_p12 = pnand %p1405_p11, %p1402_p10 }
  0x39   :  { %1410 = shalt.err (!%p1407_p12)
}
  0x3a   :  { %s1411_s11 = scalar_lea.vmem %s58_s25, 9600  ;;  %p1416_p0 = scmp.lt.s32.totalorder %s58_s25, %s58_s25 }
  0x3b   :  { %p1412_p13 = scmp.ne.s32.totalorder %s58_s25, %s1411_s11  ;;  %p1417_p1 = scmp.lt.s32.totalorder %s1411_s11, %s1411_s11 }
  0x3d   :  { %p1418_p2 = por %p1417_p1, %p1416_p0 }
  0x3f   :  { %p1419_p3 = pnand %p1418_p2, %p1412_p13 }
  0x41   :  { %1422 = shalt.err (!%p1419_p3)
}
  0x42   :  { %s1435_s2 = smov 192   ;;  %s1436_s13 = smov 12  }
  0x43   :  { %63 = dma.hbm_to_vmem [thread:$0]  %s1608_s4, 9600, %s58_s25, [#allocation9], %s1435_s2, %s1435_s2, %s1436_s13  }
  0x44   :  { %1423 = dma.done.wait [#allocation4], 128  }
  0x45   :  { %1424 = vsyncadd [#allocation4], 4294967168 }
  0x46   :  { %1425 = dma.done.wait [#allocation6], 896  }
  0x47   :  { %1426 = vsyncadd [#allocation6], 4294966400 }
  0x48   :  { %1427 = dma.done.wait [#allocation9], 9600  }
  0x49   :  { %1428 = vsyncadd [#allocation9], 4294957696  ;;  %v1437_v0 = vmov 0   ;;  %v1222_v1 = vld [vmem:[#allocation7 + $0x4] ss:$16 sps:$4 sm:$0xff]   ;;  %vm149_vm0 = vcmask 1043456  }
  0x4a   :  { %194 = vmatprep.mubr.bf16.mxu1 %v1437_v0  ;;  %v1224_v2 = vld [vmem:[#allocation7] ss:$16 sps:$4 sm:$0xff]   ;;  %162 = vmatprep.subr.bf16.mxu1 %v1222_v1  ;;  %v1229_v7 = vld [vmem:[#allocation7 + $0xc] ss:$16 sps:$4 sm:$0xff]   ;;  %vm145_vm1 = vcmask 195584   ;;  %vm368_vm2 = vcmask 1042432  }
  0x4b   :  { %v91_v3 = vld [vmem:[#allocation7 + $0x20] sm:$0xff]  ;;  %v85_v6 = vld [vmem:[#allocation3] sm:$0xff]  ;;  %163 = vmatpush1.bf16.msra.mxu1 %v1224_v2  ;;  %v92_v8 = vld [vmem:[#allocation7 + $0x28] sm:$0xff]  ;;  %v1438_v30 = vmov 0.0   ;;  %vm364_vm3 = vcmask 48128   ;;  %vm1439_vm4 = vmmov 0  }
  0x4c   :  { %v1091_v4 = vcombine.high %v91_v3, %v91_v3  ;;  %v1090_v5 = vcombine.low %v91_v3, %v91_v3  ;;  %v1232_v10 = vld [vmem:[#allocation8 + $0x4] ss:$12 sps:$4 sm:$0xff]   ;;  %v1234_v11 = vld [vmem:[#allocation8] ss:$12 sps:$4 sm:$0xff]   ;;  %v1235_v12 = vld [vmem:[#allocation8 + $0x1c] ss:$12 sps:$4 sm:$0xff]   ;;  %v86_v13 = vpack.c.bf16 %v85_v6, %v85_v6  ;;  %v1093_v15 = vcombine.high %v92_v8, %v92_v8 }
  0x4d   :  { %863 = vmatprep.subr.bf16.mxu0 %v1232_v10  ;;  %v1227_v14 = vld [vmem:[#allocation7 + $0x8] ss:$16 sps:$4 sm:$0xff]   ;;  %v1092_v16 = vcombine.low %v92_v8, %v92_v8  ;;  %v1238_v18 = vld [vmem:[#allocation8 + $0x34] ss:$12 sps:$4 sm:$0xff]   ;;  %v1240_v21 = vld [vmem:[#allocation8 + $0x30] ss:$12 sps:$4 sm:$0xff]  }
  0x4e   :  { %1094 = vmatprep.subr.msk.bf16.mxu1 %vm149_vm0, %v1091_v4  ;;  %v151_v9 = vsel %vm149_vm0, %v1090_v5, 0  ;;  %864 = vmatpush1.bf16.msra.mxu0 %v1234_v11  ;;  %v1237_v17 = vld [vmem:[#allocation8 + $0x18] ss:$12 sps:$4 sm:$0xff]   ;;  %v1243_v25 = vld [vmem:[#allocation8 + $0x48] ss:$12 sps:$4 sm:$0xff]   ;;  %vm859_vm5 = vcmask 130048  }
  0x4f   :  { %165 = vmatpush1.bf16.msra.mxu1 %v151_v9  ;;  %865 = vmatprep.subr.bf16.mxu0 %v1235_v12  ;;  %v354_v19 = vld [vmem:[%s1609_s5] sm:$0x77]  ;;  %v157_v20 = vsel %vm149_vm0, %v1092_v16, 0  ;;  %v1241_v24 = vld [vmem:[#allocation8 + $0x4c] ss:$12 sps:$4 sm:$0xff]   ;;  %v95_v12 = vlaneseq  ;;  %vm1069_vm6 = vcmask 359424  }
  0x50   :  { %203 = vmatprep.subr.bf16.mxu1 %v1229_v7  ;;  %v1099_v22 = vcombine.high %v354_v19, %v354_v19  ;;  %v1098_v23 = vcombine.low %v354_v19, %v354_v19  ;;  %v1244_v27 = vld [vmem:[#allocation8 + $0x64] ss:$12 sps:$4 sm:$0xff]   ;;  %v1246_v28 = vld [vmem:[#allocation8 + $0x60] ss:$12 sps:$4 sm:$0xff]   ;;  %v1247_v32 = vld [vmem:[#allocation8 + $0x7c] ss:$12 sps:$4 sm:$0xff]  }
  0x51   :  { %v252_v29 = vld [vmem:[#allocation5] sm:$0xff]  ;;  %v1250_v34 = vld [vmem:[#allocation8 + $0x78] ss:$12 sps:$4 sm:$0xff]   ;;  %v1252_v37 = vld [vmem:[#allocation8 + $0x94] ss:$12 sps:$4 sm:$0xff]   ;;  %vm1077_vm7 = vcmask 7168  }
  0x52   :  { %1095 = vmatmul.mubr.msk.bf16.vlgmr.msra.gmra.mrb[0].mxu1 %vm145_vm1, %v86_v13  ;;  %866 = vmatpush1.bf16.msra.mxu0 %v1237_v17  ;;  %v370_v26 = vsel %vm368_vm2, %v1098_v23, 0  ;;  %v1258_v31 = vld [vmem:[%s1609_s5 + $0x8] ss:$0 sps:$4 sm:$0x77]   ;;  %v253_v33 = vpack.c.bf16 %v252_v29, %v252_v29  ;;  %v1266_v36 = vld [vmem:[#allocation8 + $0x184] ss:$12 sps:$4 sm:$0xff]  }
  0x53   :  { %204 = vmatpush1.bf16.msra.mxu1 %v1227_v14  ;;  %235 = vmatprep.mubr.bf16.mxu1 %v1437_v0  ;;  %v376_v35 = vsel %vm368_vm2, %v1258_v31, 0  ;;  %v1254_v38 = vld [vmem:[#allocation8 + $0x90] ss:$12 sps:$4 sm:$0xff]   ;;  %v1255_v39 = vld [vmem:[#allocation8 + $0xac] ss:$12 sps:$4 sm:$0xff]  }
  0x54   :  { %1096 = vmatprep.subr.msk.bf16.mxu1 %vm149_vm0, %v1093_v15  ;;  %867 = vmatprep.subr.bf16.mxu0 %v1238_v18  ;;  %v1257_v40 = vld [vmem:[#allocation8 + $0xa8] ss:$12 sps:$4 sm:$0xff]   ;;  %v1264_v41 = vld [vmem:[#allocation8 + $0x180] ss:$12 sps:$4 sm:$0xff]   ;;  %v1259_v43 = vld [vmem:[#allocation8 + $0xc4] ss:$12 sps:$4 sm:$0xff]  }
  0x55   :  { %v1272_v42 = vld [vmem:[#allocation8 + $0x19c] ss:$12 sps:$4 sm:$0xff]   ;;  %v1270_v44 = vld [vmem:[#allocation8 + $0x198] ss:$12 sps:$4 sm:$0xff]   ;;  %v1261_v45 = vld [vmem:[#allocation8 + $0xc0] ss:$12 sps:$4 sm:$0xff]  }
  0x56   :  { %868 = vmatpush1.bf16.msra.mxu0 %v1240_v21  ;;  %v1278_v46 = vld [vmem:[#allocation8 + $0x1b4] ss:$12 sps:$4 sm:$0xff]   ;;  %v1262_v47 = vld [vmem:[#allocation8 + $0xdc] ss:$12 sps:$4 sm:$0xff]   ;;  %v1267_v49 = vld [vmem:[#allocation8 + $0xd8] ss:$12 sps:$4 sm:$0xff]  }
  0x57   :  { %206 = vmatpush1.bf16.msra.mxu1 %v157_v20  ;;  %869 = vmatprep.subr.bf16.mxu0 %v1241_v24  ;;  %v1276_v48 = vld [vmem:[#allocation8 + $0x1b0] ss:$12 sps:$4 sm:$0xff]   ;;  %v1284_v50 = vld [vmem:[#allocation8 + $0x1cc] ss:$12 sps:$4 sm:$0xff]   ;;  %v1268_v51 = vld [vmem:[#allocation8 + $0xf4] ss:$12 sps:$4 sm:$0xff]  }
  0x58   :  { %1101 = vmatprep.subr.msk.bf16.mxu1 %vm368_vm2, %v1099_v22  ;;  %v1282_v52 = vld [vmem:[#allocation8 + $0x1c8] ss:$12 sps:$4 sm:$0xff]   ;;  %v1273_v53 = vld [vmem:[#allocation8 + $0xf0] ss:$12 sps:$4 sm:$0xff]   ;;  %v1274_v55 = vld [vmem:[#allocation8 + $0x10c] ss:$12 sps:$4 sm:$0xff]  }
  0x59   :  { %v1290_v54 = vld [vmem:[#allocation8 + $0x1e4] ss:$12 sps:$4 sm:$0xff]   ;;  %v1288_v56 = vld [vmem:[#allocation8 + $0x1e0] ss:$12 sps:$4 sm:$0xff]   ;;  %v1279_v57 = vld [vmem:[#allocation8 + $0x108] ss:$12 sps:$4 sm:$0xff]  }
  0x5a   :  { %1097 = vmatmul.mubr.msk.bf16.vlgmr.msra.gmra.mrb[4].mxu1 %vm145_vm1, %v86_v13  ;;  %870 = vmatpush1.bf16.msra.mxu0 %v1243_v25  ;;  %v1280_v58 = vld [vmem:[#allocation8 + $0x124] ss:$12 sps:$4 sm:$0xff]   ;;  %v1285_v59 = vld [vmem:[#allocation8 + $0x120] ss:$12 sps:$4 sm:$0xff]   ;;  %v1286_v60 = vld [vmem:[#allocation8 + $0x13c] ss:$12 sps:$4 sm:$0xff]  }
  0x5b   :  { %379 = vmatpush1.bf16.msra.mxu1 %v370_v26  ;;  %410 = vmatprep.mubr.bf16.mxu1 %v1437_v0  ;;  %v1291_v61 = vld [vmem:[#allocation8 + $0x138] ss:$12 sps:$4 sm:$0xff]   ;;  %v1292_v62 = vld [vmem:[#allocation8 + $0x154] ss:$12 sps:$4 sm:$0xff]   ;;  %v1296_v63 = vld [vmem:[#allocation8 + $0x1fc] ss:$12 sps:$4 sm:$0xff]  }
  0x5c   :  { %1205 = vmatprep.subr.bf16.mxu1 %v1438_v30  ;;  %871 = vmatprep.subr.bf16.mxu0 %v1244_v27  ;;  %v1294_v1 = vld [vmem:[#allocation8 + $0x1f8] ss:$12 sps:$4 sm:$0xff]   ;;  %v1297_v2 = vld [vmem:[#allocation8 + $0x150] ss:$12 sps:$4 sm:$0xff]   ;;  %v1302_v4 = vld [vmem:[#allocation8 + $0x214] ss:$12 sps:$4 sm:$0xff]  }
  0x5d   :  { %v1298_v3 = vld [vmem:[#allocation8 + $0x16c] ss:$12 sps:$4 sm:$0xff]   ;;  %v1300_v5 = vld [vmem:[#allocation8 + $0x210] ss:$12 sps:$4 sm:$0xff]   ;;  %v1303_v6 = vld [vmem:[#allocation8 + $0x168] ss:$12 sps:$4 sm:$0xff]  }
  0x5e   :  { %872 = vmatpush1.bf16.msra.mxu0 %v1246_v28  ;;  %v1306_v7 = vld [vmem:[#allocation8 + $0x22c] ss:$12 sps:$4 sm:$0xff]   ;;  %v1304_v8 = vld [vmem:[#allocation8 + $0x228] ss:$12 sps:$4 sm:$0xff]   ;;  %v1310_v9 = vld [vmem:[#allocation8 + $0x244] ss:$12 sps:$4 sm:$0xff]  }
  0x5f   :  { %873 = vmatprep.subr.bf16.mxu0 %v1247_v32  ;;  %v1308_v10 = vld [vmem:[#allocation8 + $0x240] ss:$12 sps:$4 sm:$0xff]   ;;  %v1312_v11 = vld [vmem:[#allocation8 + $0xc8] ss:$12 sps:$4 sm:$0xff]   ;;  %v96_v13 = vshrl.u32 %v95_v12, 7 }
  0x60   :  { %v93_v15 = vld [vmem:[%s1607_s3] sm:$0xf]  ;;  %v1307_v32 = vld [vmem:[#allocation8 + $0x188] ss:$12 sps:$4 sm:$0xff]  }
  0x61   :  { %v1559_v14 = vsub.s32 0, %v96_v13  ;;  %v1564_v16 = vsub.s32 1, %v96_v13  ;;  %v1568_v22 = vsub.s32 2, %v96_v13  ;;  %v109_v25 = vsub.s32 3, %v96_v13 }
  0x62   :  { %1102 = vmatmul.mubr.msk.bf16.vlgmr.msra.gmra.mrb[8].mxu1 %vm364_vm3, %v253_v33  ;;  %874 = vmatpush1.bf16.msra.mxu0 %v1250_v34 }
  0x63   :  { %1206 = vmatpush3.bf16.msra.mxu1 %v376_v35  ;;  %1207 = vmatprep.mubr.msk.bf16.mxu1 %vm1439_vm4, %v1438_v30  ;;  %v98_v17 = vrot.slane %v93_v15, %v1559_v14  ;;  %v102_v18 = vrot.slane %v93_v15, %v1564_v16  ;;  %v106_v29 = vrot.slane %v93_v15, %v1568_v22 }
  0x64   :  { %904 = vmatprep.subr.bf16.mxu1 %v1266_v36  ;;  %875 = vmatprep.subr.bf16.mxu0 %v1252_v37  ;;  %v110_v31 = vrot.slane %v93_v15, %v109_v25 }
  0x66   :  { %876 = vmatpush1.bf16.msra.mxu0 %v1254_v38 }
  0x67   :  { %877 = vmatprep.subr.bf16.mxu0 %v1255_v39  ;;  %v1311_v39 = vld [vmem:[#allocation8 + $0x1a0] ss:$12 sps:$4 sm:$0xff]  }
  0x6a   :  { %1208 = vmatmul.mubr.msk.bf16.vlgmr.msra.gmra.mrb[12].mxu1 %vm364_vm3, %v253_v33  ;;  %878 = vmatpush1.bf16.msra.mxu0 %v1257_v40 }
  0x6b   :  { %905 = vmatpush1.bf16.msra.mxu1 %v1264_v41  ;;  %879 = vmatprep.subr.bf16.mxu0 %v1259_v43 }
  0x6c   :  { %906 = vmatprep.subr.bf16.mxu1 %v1272_v42 }
  0x6e   :  { %880 = vmatpush1.bf16.msra.mxu0 %v1261_v45  ;;  %v1314_v45 = vld [vmem:[#allocation8 + $0x1b8] ss:$12 sps:$4 sm:$0xff]  }
  0x6f   :  { %907 = vmatpush1.bf16.msra.mxu1 %v1270_v44  ;;  %881 = vmatprep.subr.bf16.mxu0 %v1262_v47  ;;  %v1313_v44 = vld [vmem:[#allocation8 + $0x8] ss:$12 sps:$4 sm:$0xff]   ;;  %v1315_v47 = vld [vmem:[#allocation8 + $0xe0] ss:$12 sps:$4 sm:$0xff]  }
  0x70   :  { %908 = vmatprep.subr.bf16.mxu1 %v1278_v46 }
  0x72   :  { %882 = vmatpush1.bf16.msra.mxu0 %v1267_v49 }
  0x73   :  { %909 = vmatpush1.bf16.msra.mxu1 %v1276_v48  ;;  %883 = vmatprep.subr.bf16.mxu0 %v1268_v51  ;;  %v1317_v51 = vld [vmem:[#allocation8 + $0x1d0] ss:$12 sps:$4 sm:$0xff]  }
  0x74   :  { %910 = vmatprep.subr.bf16.mxu1 %v1284_v50  ;;  %v1316_v50 = vld [vmem:[#allocation8 + $0x20] ss:$12 sps:$4 sm:$0xff]  }
  0x76   :  { %884 = vmatpush1.bf16.msra.mxu0 %v1273_v53  ;;  %v1318_v53 = vld [vmem:[#allocation8 + $0xf8] ss:$12 sps:$4 sm:$0xff]  }
  0x77   :  { %911 = vmatpush1.bf16.msra.mxu1 %v1282_v52  ;;  %885 = vmatprep.subr.bf16.mxu0 %v1274_v55  ;;  %v1319_v55 = vld [vmem:[#allocation8 + $0x38] ss:$12 sps:$4 sm:$0xff]  }
  0x78   :  { %912 = vmatprep.subr.bf16.mxu1 %v1290_v54 }
  0x7a   :  { %886 = vmatpush1.bf16.msra.mxu0 %v1279_v57  ;;  %v1321_v57 = vld [vmem:[#allocation8 + $0x110] ss:$12 sps:$4 sm:$0xff]  }
  0x7b   :  { %913 = vmatpush1.bf16.msra.mxu1 %v1288_v56  ;;  %887 = vmatprep.subr.bf16.mxu0 %v1280_v58  ;;  %v1320_v56 = vld [vmem:[#allocation8 + $0x1e8] ss:$12 sps:$4 sm:$0xff]  }
  0x7c   :  { %914 = vmatprep.subr.bf16.mxu1 %v1296_v63  ;;  %v1324_v63 = vld [vmem:[#allocation8 + $0x128] ss:$12 sps:$4 sm:$0xff]  }
  0x7e   :  { %888 = vmatpush1.bf16.msra.mxu0 %v1285_v59 }
  0x7f   :  { %889 = vmatprep.subr.bf16.mxu0 %v1286_v60  ;;  %915 = vmatpush1.bf16.msra.mxu1 %v1294_v1  ;;  %v1322_v60 = vld [vmem:[#allocation8 + $0x50] ss:$12 sps:$4 sm:$0xff]  }
  0x80   :  { %916 = vmatprep.subr.bf16.mxu1 %v1302_v4  ;;  %v1327_v4 = vld [vmem:[#allocation8 + $0x140] ss:$12 sps:$4 sm:$0xff]  }
  0x82   :  { %890 = vmatpush1.bf16.msra.mxu0 %v1291_v61  ;;  %v1323_v61 = vld [vmem:[#allocation8 + $0x200] ss:$12 sps:$4 sm:$0xff]  }
  0x83   :  { %891 = vmatprep.subr.bf16.mxu0 %v1292_v62  ;;  %917 = vmatpush1.bf16.msra.mxu1 %v1300_v5  ;;  %v1328_v5 = vld [vmem:[#allocation8 + $0x80] ss:$12 sps:$4 sm:$0xff]  }
  0x84   :  { %918 = vmatprep.subr.bf16.mxu1 %v1306_v7  ;;  %v1330_v7 = vld [vmem:[#allocation8 + $0x158] ss:$12 sps:$4 sm:$0xff]  }
  0x86   :  { %892 = vmatpush1.bf16.msra.mxu0 %v1297_v2  ;;  %v1325_v2 = vld [vmem:[#allocation8 + $0x68] ss:$12 sps:$4 sm:$0xff]  }
  0x87   :  { %893 = vmatprep.subr.bf16.mxu0 %v1298_v3  ;;  %919 = vmatpush1.bf16.msra.mxu1 %v1304_v8  ;;  %v1326_v3 = vld [vmem:[#allocation8 + $0x218] ss:$12 sps:$4 sm:$0xff]  }
  0x88   :  { %920 = vmatprep.subr.bf16.mxu1 %v1310_v9  ;;  %v1331_v8 = vld [vmem:[#allocation8 + $0x98] ss:$12 sps:$4 sm:$0xff]   ;;  %v1332_v9 = vld [vmem:[#allocation8 + $0x248] ss:$12 sps:$4 sm:$0xff]  }
  0x8a   :  { %894 = vmatpush1.bf16.msra.mxu0 %v1303_v6  ;;  %v1329_v6 = vld [vmem:[#allocation8 + $0x230] ss:$12 sps:$4 sm:$0xff]  }
  0x8b   :  { %985 = vmatprep.subr.bf16.mxu0 %v1437_v0  ;;  %921 = vmatpush1.bf16.msra.mxu1 %v1308_v10  ;;  %v1333_v10 = vld [vmem:[#allocation8 + $0x170] ss:$12 sps:$4 sm:$0xff]  }
  0x8c   :  { %1183 = vmatprep.subr.bf16.mxu1 %v1312_v11  ;;  %v1334_v11 = vld [vmem:[#allocation8 + $0xb0] ss:$12 sps:$4 sm:$0xff]  }
 0x125   :  { %v196_v19 = vpop.f32.mrb[0].mxu1 }
 0x126   :  { %v197_v20 = vadd.f32 %v196_v19, %v98_v17  ;;  %v198_v21 = vpop.f32.mrb[1].mxu1 }
 0x127   :  { %v199_v23 = vadd.f32 %v198_v21, %v102_v18  ;;  %v200_v24 = vpop.f32.mrb[2].mxu1 }
 0x128   :  { %v244_v26 = vmax.f32 %v197_v20, 0.0  ;;  %v201_v27 = vpop.f32.mrb[3].mxu1  ;;  %v1025_v20 = vld [vmem:[%s1610_s6] sm:$0x7] }
 0x129   :  { %v245_v28 = vmax.f32 %v199_v23, 0.0  ;;  %v1034_v23 = vrot.slane %v1025_v20, %v1564_v16  ;;  %v1048_v24 = vld [vmem:[%s1611_s7] sm:$0x7] }
 0x12a   :  { %v1571_v33 = vpack.c.bf16 %v244_v26, %v244_v26 }
 0x12b   :  { %v249_v30 = vpack.c.bf16 %v245_v28, %v245_v28 }
 0x12d   :  { %v237_v34 = vpop.f32.mrb[4].mxu1  ;;  %895 = vmatprep.mubr.bf16.mxu0 %v249_v30 }
 0x12e   :  { %v238_v35 = vadd.f32 %v237_v34, %v106_v29  ;;  %v239_v36 = vpop.f32.mrb[5].mxu1  ;;  %896 = vmatmul.mubr.bf16.vlgmr.msra.gmra.mrb[0].mxu0 %v1571_v33 }
 0x12f   :  { %v240_v37 = vadd.f32 %v239_v36, %v110_v31  ;;  %986 = vmatpush1.bf16.msra.mxu0 %v1307_v32  ;;  %v241_v38 = vpop.f32.mrb[6].mxu1  ;;  %v1053_v31 = vrot.slane %v1048_v24, %v1559_v14 }
 0x130   :  { %v246_v40 = vmax.f32 %v238_v35, 0.0  ;;  %v242_v41 = vpop.f32.mrb[7].mxu1  ;;  %987 = vmatprep.subr.bf16.mxu0 %v1437_v0 }
 0x131   :  { %v247_v42 = vmax.f32 %v240_v37, 0.0 }
 0x132   :  { %v250_v46 = vpack.c.bf16 %v246_v40, %v246_v40 }
 0x133   :  { %v251_v43 = vpack.c.bf16 %v247_v42, %v247_v42  ;;  %988 = vmatpush1.bf16.msra.mxu0 %v1311_v39 }
 0x134   :  { %989 = vmatprep.subr.bf16.mxu0 %v1437_v0 }
 0x135   :  { %1179 = vmatprep.mubr.msk.bf16.mxu1 %vm859_vm5, %v251_v43  ;;  %1180 = vmatprep.mubr.msk.bf16.mxu0 %vm859_vm5, %v251_v43  ;;  %v412_v48 = vpop.f32.mrb[8].mxu1 }
 0x136   :  { %937 = vmatmul.mubr.bf16.vlgmr.msra.gmra.mrb[16].mxu1 %v250_v46  ;;  %v414_v49 = vpop.f32.mrb[9].mxu1 }
 0x137   :  { %1184 = vmatpush3.bf16.msra.mxu1 %v1313_v44  ;;  %990 = vmatpush1.bf16.msra.mxu0 %v1314_v45  ;;  %v416_v52 = vpop.f32.mrb[10].mxu1 }
 0x138   :  { %977 = vmatprep.mubr.bf16.mxu1 %v249_v30  ;;  %1185 = vmatprep.subr.bf16.mxu1 %v1315_v47  ;;  %v417_v54 = vpop.f32.mrb[11].mxu1 }
 0x139   :  { %991 = vmatprep.subr.bf16.mxu0 %v1437_v0 }
 0x13b   :  { %1186 = vmatpush3.bf16.msra.mxu1 %v1316_v50  ;;  %992 = vmatpush1.bf16.msra.mxu0 %v1317_v51  ;;  %v1061_v50 = vrot.slane %v1048_v24, %v1568_v22 }
 0x13c   :  { %1187 = vmatprep.subr.bf16.mxu1 %v1318_v53  ;;  %993 = vmatprep.subr.bf16.mxu0 %v1437_v0 }
 0x13d   :  { %v1578_v58 = vpop.f32.mrb[12].mxu1 }
 0x13e   :  { %v1209_v59 = vpop.f32.mrb[13].mxu1 }
 0x13f   :  { %1188 = vmatpush3.bf16.msra.mxu1 %v1319_v55  ;;  %994 = vmatpush1.bf16.msra.mxu0 %v1320_v56  ;;  %v456_v62 = vpop.f32.mrb[14].mxu1  ;;  %v1075_v55 = vstv %s1612_s8 }
 0x140   :  { %1189 = vmatprep.subr.bf16.mxu1 %v1321_v57  ;;  %995 = vmatprep.subr.bf16.mxu0 %v1437_v0  ;;  %v1210_v1 = vpop.f32.mrb[15].mxu1 }
 0x143   :  { %1190 = vmatpush3.bf16.msra.mxu1 %v1322_v60  ;;  %996 = vmatpush1.bf16.msra.mxu0 %v1323_v61 }
 0x144   :  { %1191 = vmatprep.subr.bf16.mxu1 %v1324_v63  ;;  %997 = vmatprep.subr.bf16.mxu0 %v1437_v0 }
 0x147   :  { %1192 = vmatpush3.bf16.msra.mxu1 %v1325_v2  ;;  %998 = vmatpush1.bf16.msra.mxu0 %v1326_v3 }
 0x148   :  { %1193 = vmatprep.subr.bf16.mxu1 %v1327_v4  ;;  %999 = vmatprep.subr.bf16.mxu0 %v1437_v0 }
 0x14b   :  { %1194 = vmatpush3.bf16.msra.mxu1 %v1328_v5  ;;  %1000 = vmatpush1.bf16.msra.mxu0 %v1329_v6 }
 0x14c   :  { %1195 = vmatprep.subr.bf16.mxu1 %v1330_v7  ;;  %1001 = vmatprep.subr.bf16.mxu0 %v1437_v0  ;;  %v1030_v0 = vrot.slane %v1025_v20, %v1559_v14  ;;  %v1038_v14 = vrot.slane %v1025_v20, %v1568_v22 }
 0x14f   :  { %1196 = vmatpush3.bf16.msra.mxu1 %v1331_v8  ;;  %1002 = vmatpush1.bf16.msra.mxu0 %v1332_v9 }
 0x150   :  { %1197 = vmatprep.subr.bf16.mxu1 %v1333_v10 }
 0x152   :  { %1018 = vmatmul.mubr.bf16.vlgmr.msra.gmra.mrb[4].mxu0 %v250_v46 }
 0x153   :  { %1198 = vmatpush3.bf16.msra.mxu1 %v1334_v11 }
 0x156   :  { %978 = vmatmul.mubr.bf16.vlgmr.msra.gmra.mrb[20].mxu1 %v1571_v33  ;;  %v1057_v33 = vrot.slane %v1048_v24, %v1564_v16 }
 0x201   :  { %v897_v12 = vpop.f32.mrb[0].mxu0 }
 0x202   :  { %v898_v13 = vadd.f32 %v897_v12, %v412_v48  ;;  %v899_v15 = vpop.f32.mrb[1].mxu0 }
 0x203   :  { %v900_v17 = vadd.f32 %v899_v15, %v414_v49  ;;  %v901_v18 = vpop.f32.mrb[2].mxu0 }
 0x204   :  { %v902_v19 = vpop.f32.mrb[3].mxu0 }
 0x209   :  { %v938_v21 = vpop.f32.mrb[16].mxu1 }
 0x20a   :  { %v939_v25 = vadd.f32 %v938_v21, %v898_v13  ;;  %v940_v26 = vpop.f32.mrb[17].mxu1 }
 0x20b   :  { %v941_v27 = vadd.f32 %v940_v26, %v900_v17  ;;  %v942_v28 = vpop.f32.mrb[18].mxu1 }
 0x20c   :  { %v1042_v29 = vadd.f32 %v1030_v0, %v939_v25  ;;  %v943_v30 = vpop.f32.mrb[19].mxu1 }
 0x20d   :  { %v1043_v32 = vadd.f32 %v1034_v23, %v941_v27 }
 0x20e   :  { %v1045_v34 = vmax.f32 %v1042_v29, 0.0 }
 0x20f   :  { %v1046_v35 = vmax.f32 %v1043_v32, 0.0 }
 0x210   :  { %v1065_v36 = vmul.f32 %v1053_v31, %v1045_v34 }
 0x211   :  { %v1066_v37 = vmul.f32 %v1057_v33, %v1046_v35 }
 0x213   :  { %v1068_v38 = vadd.f32 %v1066_v37, %v1065_v36 }
 0x225   :  { %v1019_v39 = vpop.f32.mrb[4].mxu0 }
 0x226   :  { %v1021_v40 = vpop.f32.mrb[5].mxu0 }
 0x227   :  { %v1022_v41 = vpop.f32.mrb[6].mxu0 }
 0x228   :  { %v1023_v42 = vpop.f32.mrb[7].mxu0 }
 0x229   :  { %v1199_v43 = vpop.f32.mrb[20].mxu1 }
 0x22a   :  { %v1200_v44 = vpop.f32.mrb[21].mxu1 }
 0x22b   :  { %v1201_v45 = vadd.f32 %v1200_v44, %v1199_v43  ;;  %v1202_v46 = vpop.f32.mrb[22].mxu1 }
 0x22c   :  { %v1203_v47 = vpop.f32.mrb[23].mxu1 }
 0x22d   :  { %v980_v48 = vadd.f32 %v1201_v45, %v1578_v58 }
 0x22f   :  { %v1020_v49 = vadd.f32 %v1019_v39, %v980_v48 }
 0x231   :  { %v1044_v16 = vadd.f32 %v1038_v14, %v1020_v49 }
 0x233   :  { %v1047_v51 = vmax.f32 %v1044_v16, 0.0 }
 0x235   :  { %v1067_v52 = vmul.f32 %v1061_v50, %v1047_v51 }
 0x237   :  { %v1070_v53 = vsel %vm1069_vm6, %v1067_v52, 0.0 }
 0x238   :  { %v1071_v54 = vadd.f32 %v1070_v53, %v1068_v38 }
 0x23a   :  { %1072 = vadd.xlane.f32.xlu0 %v1071_v54 }
 0x2c7   :  { %v1073_v56 = vpop.xlane.xlu0 %1072 }
 0x2c8   :  { %v1076_v57 = vadd.f32 %v1075_v55, %v1073_v56 }
 0x2ca   :  { %1078 = vst.msk [vmem:[%s1613_s9] sm:$0xff] %vm1077_vm7, %v1076_v57 }
 0x2cb   :  { %1083 = vsyncpa [#allocation4], 1 }
 0x2cc   :  { %1084 = vsyncpa [#allocation6], 1 }
 0x2cd   :  { %1085 = vsyncpa [#allocation9], 1 }

</bundles_post_ra>
